<compile_context>
chip_gen: v7x
topology: tpu7x:2x2x1
jax: 0.10.0
libtpu: 0.0.40
codegen_flags: <defaults>
</compile_context>

<pallas_src>
import math

import jax
import jax.numpy as jnp
from jax.experimental import pallas as pl
from jax.experimental.pallas import tpu as pltpu


# Stacked temporal-table layout: [month(13) | day(32) | weekday(7) | hour(24)],
# zero-padded to 128 rows for lane alignment.
_MONTH_SIZE, _DAY_SIZE, _WEEKDAY_SIZE, _HOUR_SIZE = 13, 32, 7, 24
_OFF_MONTH = 0
_OFF_DAY = _OFF_MONTH + _MONTH_SIZE          # 13
_OFF_WEEKDAY = _OFF_DAY + _DAY_SIZE          # 45
_OFF_HOUR = _OFF_WEEKDAY + _WEEKDAY_SIZE     # 52
_TAB_ROWS = 128


# ---------------------------------------------------------------------------
# Pallas kernel: conv-as-3-tap-matmul + fused temporal one-hot + positional
# ---------------------------------------------------------------------------
def _embed_kernel(x_ref, halo_ref, mark_ref, w0_ref, w1_ref, w2_ref,
                  ttab_ref, pos_ref, o_ref):
    # x_ref   : (b_tile, l_tile, c_in)  f32   value tile (x read once from HBM)
    # halo_ref: (b_tile, 1, 2, c_in)    f32   [x[start-1], x[start+l_tile]] circular
    # mark_ref: (b_tile, l_tile, 4)     int32 [month, day, weekday, hour]
    # w*_ref  : (c_in, d_model)         bf16  conv taps k=0,1,2 (VMEM-resident)
    # ttab_ref: (128, d_model)          bf16  stacked fixed tables (VMEM-resident)
    # pos_ref : (l_tile, d_model)       bf16  positional tile (shared over batch)
    # o_ref   : (b_tile, l_tile, d_model)
    b_tile, l_tile, c_in = x_ref.shape
    d_model = o_ref.shape[-1]
    n_rows = ttab_ref.shape[0]
    rows = b_tile * l_tile
    bf = jnp.bfloat16

    # TokenEmbedding: circular Conv1d(k=3, pad=1) as three small-K matmuls.
    x = x_ref[...]
    halo = halo_ref[...][:, 0]                                   # (b_tile, 2, c_in)
    x_prev = jnp.concatenate([halo[:, 0:1, :], x[:, :-1, :]], axis=1)
    x_next = jnp.concatenate([x[:, 1:, :], halo[:, 1:2, :]], axis=1)
    conv = jnp.dot(x_prev.astype(bf).reshape(rows, c_in), w0_ref[...],
                   preferred_element_type=jnp.float32)
    conv += jnp.dot(x.astype(bf).reshape(rows, c_in), w1_ref[...],
                    preferred_element_type=jnp.float32)
    conv += jnp.dot(x_next.astype(bf).reshape(rows, c_in), w2_ref[...],
                    preferred_element_type=jnp.float32)

    # TemporalEmbedding: 4 fixed-table gathers fused as one one-hot matmul.
    # Sub-table index ranges are disjoint, so a single OR-reduce + one bf16
    # cast builds the combined one-hot (out-of-range indices select nothing).
    mark = mark_ref[...].reshape(rows, 4)
    cols = jax.lax.broadcasted_iota(jnp.int32, (rows, n_rows), 1)
    onehot = ((mark[:, 0:1] + _OFF_MONTH == cols)
              | (mark[:, 1:2] + _OFF_DAY == cols)
              | (mark[:, 2:3] + _OFF_WEEKDAY == cols)
              | (mark[:, 3:4] + _OFF_HOUR == cols)).astype(bf)
    temporal = jnp.dot(onehot, ttab_ref[...],
                       preferred_element_type=jnp.float32)

    # Epilogue: + positional, store lane-dense.  Elementwise math stays f32
    # (v5e VPU has no bf16 path); only the MXU operands were narrowed above.
    out = (conv + temporal).reshape(b_tile, l_tile, d_model)
    out = out + pos_ref[...].astype(jnp.float32)[None, :, :]
    o_ref[...] = out.astype(o_ref.dtype)
    # TODO(synk): training-mode dropout (pltpu.prng_seed / prng_random_bits
    # + mask) is not implemented; eval-mode Dropout(p=0.1) is identity.


# ---------------------------------------------------------------------------
# Chip-aware tile sizing
# ---------------------------------------------------------------------------
def _vmem_capacity_bytes():
    try:
        info = pltpu.get_tpu_info()
        for attr in ("vmem_capacity_bytes", "vmem_size_bytes", "vmem_bytes"):
            v = getattr(info, attr, None)
            if v:
                return int(v)
    except Exception:
        pass
    return 64 << 20            # conservative (v7x); v5e/v6e have 128 MiB


def _step_vmem_bytes(b_tile, l_tile, c_in, d_model, out_bytes):
    """Rough per-grid-step VMEM: double-buffered streams + resident + temps."""
    rows = b_tile * l_tile
    streamed = 2 * (rows * (c_in * 4 + 4 * 4 + d_model * out_bytes)   # x, mark, out
                    + l_tile * d_model * 2                            # pos (bf16)
                    + b_tile * 2 * c_in * 4)                          # halo
    resident = (3 * c_in + _TAB_ROWS) * d_model * 2                   # taps + ttab
    temps = rows * (3 * c_in * 2 + _TAB_ROWS * 2 + 2 * d_model * 4)   # shifted x, onehot, f32 accs
    return streamed + resident + temps


def _choose_l_tile(L, max_tile):
    """Largest divisor of L that is a multiple of 16 (preferred; bf16-native
    sublane tile) or 8 and <= max_tile; falls back to full L only if no
    aligned divisor exists."""
    if L <= max_tile:
        return L
    for step in (16, 8):
        t = (max_tile // step) * step
        while t >= step:
            if L % t == 0:
                return t
            t -= step
    # TODO(synk): masked ragged last tile instead of the full-L fallback.
    return L


def _derive_tiles(B, L, c_in, d_model, out_bytes, max_l_tile, max_b_tile):
    cap = _vmem_capacity_bytes()
    budget = int(cap * 0.6)

    if max_l_tile is None:
        max_l_tile = 16
        while (max_l_tile < 8192 and
               _step_vmem_bytes(1, 2 * max_l_tile, c_in, d_model,
                                out_bytes) <= budget):
            max_l_tile *= 2
    l_tile = _choose_l_tile(L, max_l_tile)

    # Batch blocking: grow per-step bytes (amortizes ~0.35us/step pipeline
    # overhead; matters most on v7x and at short L) within the VMEM budget.
    if max_b_tile is None:
        max_b_tile = B
    b_tile = 1
    if l_tile % 8 == 0:          # keeps the in-kernel (b,l)->rows merge aligned
        out_tile_cap = 8 << 20   # no benefit past a few MiB per step
        for d in range(2, B + 1):
            if B % d or d > max_b_tile:
                continue
            if (_step_vmem_bytes(d, l_tile, c_in, d_model, out_bytes) <= budget
                    and d * l_tile * d_model * out_bytes <= out_tile_cap):
                b_tile = d

    need = _step_vmem_bytes(b_tile, l_tile, c_in, d_model, out_bytes)
    vmem_limit = min(cap - (2 << 20),
                     max(32 << 20, int(need * 1.5) + (4 << 20)))
    return l_tile, b_tile, int(vmem_limit)


# ---------------------------------------------------------------------------
# pallas_call wrapper
# ---------------------------------------------------------------------------
def _fused_embed(x, x_halo, x_mark, w0, w1, w2, ttab, pos, out_dtype,
                 l_tile, b_tile, vmem_limit_bytes):
    B, L, c_in = x.shape
    D = w0.shape[1]
    NT = ttab.shape[0]
    n_l = L // l_tile
    n_b = B // b_tile
    out_bytes = jnp.dtype(out_dtype).itemsize

    cost = pl.CostEstimate(
        flops=2 * B * L * (3 * c_in + NT) * D,
        transcendentals=0,
        bytes_accessed=int(
            x.size * 4 + x_halo.size * 4 + x_mark.size * 4
            + (w0.size + w1.size + w2.size + ttab.size + pos.size) * 2
            + B * L * D * out_bytes))

    return pl.pallas_call(
        _embed_kernel,
        out_shape=jax.ShapeDtypeStruct((B, L, D), out_dtype),
        # L-tiles outer, batch inner: pos / weights / tables keep the same
        # block index across the inner batch axis, so they are DMA'd once per
        # L-tile (pos) or once total (weights / tables), never per batch step.
        grid=(n_l, n_b),
        in_specs=[
            pl.BlockSpec((b_tile, l_tile, c_in), lambda l, b: (b, l, 0)),
            pl.BlockSpec((b_tile, 1, 2, c_in), lambda l, b: (b, l, 0, 0)),
            pl.BlockSpec((b_tile, l_tile, 4), lambda l, b: (b, l, 0)),
            pl.BlockSpec((c_in, D), lambda l, b: (0, 0)),
            pl.BlockSpec((c_in, D), lambda l, b: (0, 0)),
            pl.BlockSpec((c_in, D), lambda l, b: (0, 0)),
            pl.BlockSpec((NT, D), lambda l, b: (0, 0)),
            pl.BlockSpec((l_tile, D), lambda l, b: (l, 0)),
            # If profiling shows exposed DMA, add pipeline_mode=pl.Buffered(3)
            # to the x / out streams.
        ],
        out_specs=pl.BlockSpec((b_tile, l_tile, D), lambda l, b: (b, l, 0)),
        compiler_params=pltpu.CompilerParams(
            dimension_semantics=("parallel", "parallel"),
            vmem_limit_bytes=vmem_limit_bytes),
        cost_estimate=cost,
    )(x, x_halo, x_mark, w0, w1, w2, ttab, pos)


# ---------------------------------------------------------------------------
# Parameter / table construction (deterministic, in-script)
# ---------------------------------------------------------------------------
def sinusoid_table(n, d_model):
    """Matches PositionalEmbedding / FixedEmbedding table construction."""
    position = jnp.arange(n, dtype=jnp.float32)[:, None]
    div_term = jnp.exp(
        jnp.arange(0, d_model, 2, dtype=jnp.float32)
        * -(math.log(10000.0) / d_model))
    ang = position * div_term
    tab = jnp.zeros((n, d_model), dtype=jnp.float32)
    tab = tab.at[:, 0::2].set(jnp.sin(ang))
    tab = tab.at[:, 1::2].set(jnp.cos(ang))
    return tab


def make_temporal_table(d_model):
    """Stacked [month|day|weekday|hour] fixed tables, zero-padded to 128 rows."""
    tab = jnp.zeros((_TAB_ROWS, d_model), jnp.float32)
    tab = tab.at[_OFF_MONTH:_OFF_MONTH + _MONTH_SIZE].set(
        sinusoid_table(_MONTH_SIZE, d_model))
    tab = tab.at[_OFF_DAY:_OFF_DAY + _DAY_SIZE].set(
        sinusoid_table(_DAY_SIZE, d_model))
    tab = tab.at[_OFF_WEEKDAY:_OFF_WEEKDAY + _WEEKDAY_SIZE].set(
        sinusoid_table(_WEEKDAY_SIZE, d_model))
    tab = tab.at[_OFF_HOUR:_OFF_HOUR + _HOUR_SIZE].set(
        sinusoid_table(_HOUR_SIZE, d_model))
    return tab


def init_token_conv_weight(key, c_in, d_model, ksize=3):
    """kaiming_normal_(mode='fan_in', nonlinearity='leaky_relu') on a
    Conv1d weight of shape (d_model, c_in, ksize)."""
    fan_in = c_in * ksize
    std = math.sqrt(2.0) / math.sqrt(fan_in)
    return std * jax.random.normal(key, (d_model, c_in, ksize), jnp.float32)


# ---------------------------------------------------------------------------
# DataEmbedding forward (embed_type='fixed', freq='h', eval-mode dropout)
# ---------------------------------------------------------------------------
def data_embedding(x, x_mark, conv_w, ttab, pos_table, *,
                   out_dtype=jnp.float32, max_l_tile=None, max_b_tile=None):
    """x: (B, L, c_in) f32, x_mark: (B, L, 4) int -> (B, L, d_model).

    Precision contract: MXU operands (x tiles, conv taps, one-hot, tables,
    positional) are streamed/held in bf16 with f32 accumulation; out-of-range
    time-feature indices select nothing (zero temporal row) instead of
    erroring like nn.Embedding.
    """
    B, L, c_in = x.shape
    d_model = conv_w.shape[0]
    assert L <= pos_table.shape[0], "sequence longer than positional table"

    if x_mark is None:
        # x_mark=None module branch: indices past the 128-row table hit no
        # one-hot column, so temporal contribution is exactly zero.
        x_mark = jnp.full((B, L, 4), _TAB_ROWS, jnp.int32)

    l_tile, b_tile, vmem_limit = _derive_tiles(
        B, L, c_in, d_model, out_bytes=jnp.dtype(out_dtype).itemsize,
        max_l_tile=max_l_tile, max_b_tile=max_b_tile)
    n_l = L // l_tile

    # +/-1 circular halo rows per L-tile (tiny gather; replaces the old
    # 3x-stacked xs stream and its wrapper-level HBM round trip).
    starts = jnp.arange(n_l, dtype=jnp.int32) * l_tile
    halo_idx = jnp.stack([(starts - 1) % L, (starts + l_tile) % L], axis=1)
    x_halo = x[:, halo_idx, :]                       # (B, n_l, 2, c_in) f32

    # conv_w: (d_model, c_in, 3) -> three (c_in, d_model) bf16 taps.
    w0 = conv_w[:, :, 0].T.astype(jnp.bfloat16)
    w1 = conv_w[:, :, 1].T.astype(jnp.bfloat16)
    w2 = conv_w[:, :, 2].T.astype(jnp.bfloat16)

    pos = pos_table[:L].astype(jnp.bfloat16)
    ttab_bf = ttab.astype(jnp.bfloat16)

    return _fused_embed(x, x_halo, x_mark.astype(jnp.int32), w0, w1, w2,
                        ttab_bf, pos, out_dtype, l_tile, b_tile, vmem_limit)


# ---------------------------------------------------------------------------
# Pure-JAX f32 reference (for the correctness check)
# ---------------------------------------------------------------------------
def data_embedding_ref(x, x_mark, conv_w, pos_table):
    B, L, _ = x.shape
    d_model = conv_w.shape[0]
    hi = jax.lax.Precision.HIGHEST
    x_prev = jnp.roll(x, 1, axis=1)
    x_next = jnp.roll(x, -1, axis=1)
    conv = (jnp.einsum('blc,dc->bld', x_prev, conv_w[:, :, 0], precision=hi)
            + jnp.einsum('blc,dc->bld', x, conv_w[:, :, 1], precision=hi)
            + jnp.einsum('blc,dc->bld', x_next, conv_w[:, :, 2], precision=hi))
    month_t = sinusoid_table(_MONTH_SIZE, d_model)
    day_t = sinusoid_table(_DAY_SIZE, d_model)
    weekday_t = sinusoid_table(_WEEKDAY_SIZE, d_model)
    hour_t = sinusoid_table(_HOUR_SIZE, d_model)
    temporal = (jnp.take(hour_t, x_mark[:, :, 3], axis=0)
                + jnp.take(weekday_t, x_mark[:, :, 2], axis=0)
                + jnp.take(day_t, x_mark[:, :, 1], axis=0)
                + jnp.take(month_t, x_mark[:, :, 0], axis=0))
    return conv + temporal + pos_table[:L][None]


if __name__ == "__main__":
    B, L, c_in, d_model = 2, 16, 4, 32

    key = jax.random.PRNGKey(0)
    kx, kw, km = jax.random.split(key, 3)

    x = jax.random.normal(kx, (B, L, c_in), jnp.float32)
    # x_mark columns: [month(0..12), day(0..31), weekday(0..6), hour(0..23)]
    x_mark = jnp.stack([
        jax.random.randint(jax.random.fold_in(km, 0), (B, L), 0, 13),
        jax.random.randint(jax.random.fold_in(km, 1), (B, L), 0, 32),
        jax.random.randint(jax.random.fold_in(km, 2), (B, L), 0, 7),
        jax.random.randint(jax.random.fold_in(km, 3), (B, L), 0, 24),
    ], axis=-1).astype(jnp.int32)

    conv_w = init_token_conv_weight(kw, c_in, d_model)
    ttab = make_temporal_table(d_model)
    pos_table = sinusoid_table(5000, d_model)

    ref = data_embedding_ref(x, x_mark, conv_w, pos_table)

    # 1) Forced-small tiles: (2, 2) grid at this toy size so the L-tiling,
    #    per-tile circular halo and per-tile positional index map are
    #    actually exercised.
    out_small = data_embedding(x, x_mark, conv_w, ttab, pos_table,
                               max_l_tile=8, max_b_tile=1)
    out_small = jax.block_until_ready(out_small)
    assert out_small.shape == (B, L, d_model)
    assert jnp.allclose(out_small, ref, atol=5e-2, rtol=5e-2), (
        float(jnp.max(jnp.abs(out_small - ref))))

    # 2) Auto-derived tiles (production path: chip-aware l_tile / b_tile
    #    batch blocking + explicit vmem_limit_bytes).
    out_auto = data_embedding(x, x_mark, conv_w, ttab, pos_table)
    out_auto = jax.block_until_ready(out_auto)
    assert out_auto.shape == (B, L, d_model)
    assert jnp.allclose(out_auto, ref, atol=5e-2, rtol=5e-2), (
        float(jnp.max(jnp.abs(out_auto - ref))))

    print("KERNEL_OK")
</pallas_src>

<mosaic_0001>
module attributes {stable_mosaic.version = 11 : i64} {
  func.func @_embed_kernel(%arg0: i32, %arg1: i32, %arg2: memref<1x8x4xf32, #tpu.memory_space<vmem>>, %arg3: memref<1x1x2x4xf32, #tpu.memory_space<vmem>>, %arg4: memref<1x8x4xi32, #tpu.memory_space<vmem>>, %arg5: memref<4x32xbf16, #tpu.memory_space<vmem>>, %arg6: memref<4x32xbf16, #tpu.memory_space<vmem>>, %arg7: memref<4x32xbf16, #tpu.memory_space<vmem>>, %arg8: memref<128x32xbf16, #tpu.memory_space<vmem>>, %arg9: memref<8x32xbf16, #tpu.memory_space<vmem>>, %arg10: memref<1x8x32xf32, #tpu.memory_space<vmem>>) attributes {dimension_semantics = [#tpu.dimension_semantics<parallel>, #tpu.dimension_semantics<parallel>], iteration_bounds = array<i64: 2, 2>, scalar_prefetch = 0 : i64, scratch_operands = 0 : i64, tpu.core_type = #tpu.core_type<tc>, window_params = [{transform_indices = @transform_0, window_bounds = array<i64: 1, 8, 4>}, {transform_indices = @transform_1, window_bounds = array<i64: 1, 1, 2, 4>}, {transform_indices = @transform_2, window_bounds = array<i64: 1, 8, 4>}, {pipeline_mode = #tpu.pipeline_mode<synchronous>, transform_indices = @transform_3, window_bounds = array<i64: 4, 32>}, {pipeline_mode = #tpu.pipeline_mode<synchronous>, transform_indices = @transform_4, window_bounds = array<i64: 4, 32>}, {pipeline_mode = #tpu.pipeline_mode<synchronous>, transform_indices = @transform_5, window_bounds = array<i64: 4, 32>}, {pipeline_mode = #tpu.pipeline_mode<synchronous>, transform_indices = @transform_6, window_bounds = array<i64: 128, 32>}, {transform_indices = @transform_7, window_bounds = array<i64: 8, 32>}, {transform_indices = @transform_8, window_bounds = array<i64: 1, 8, 32>}]} {
    %c0 = arith.constant 0 : index
    %c0_0 = arith.constant 0 : index
    %c0_1 = arith.constant 0 : index
    %0 = vector.load %arg2[%c0, %c0_0, %c0_1] : memref<1x8x4xf32, #tpu.memory_space<vmem>>, vector<1x8x4xf32>
    %c0_2 = arith.constant 0 : index
    %c0_3 = arith.constant 0 : index
    %c0_4 = arith.constant 0 : index
    %c0_5 = arith.constant 0 : index
    %1 = vector.load %arg3[%c0_2, %c0_3, %c0_4, %c0_5] : memref<1x1x2x4xf32, #tpu.memory_space<vmem>>, vector<1x1x2x4xf32>
    %2 = vector.shape_cast %1 : vector<1x1x2x4xf32> to vector<1x2x4xf32>
    %3 = vector.extract_strided_slice %2 {offsets = [0, 0, 0], sizes = [1, 1, 4], strides = [1, 1, 1]} : vector<1x2x4xf32> to vector<1x1x4xf32>
    %4 = vector.extract_strided_slice %0 {offsets = [0, 0, 0], sizes = [1, 7, 4], strides = [1, 1, 1]} : vector<1x8x4xf32> to vector<1x7x4xf32>
    %5 = tpu.concatenate %3, %4 in 1 : vector<1x1x4xf32>, vector<1x7x4xf32> -> vector<1x8x4xf32>
    %6 = vector.extract_strided_slice %0 {offsets = [0, 1, 0], sizes = [1, 7, 4], strides = [1, 1, 1]} : vector<1x8x4xf32> to vector<1x7x4xf32>
    %7 = vector.extract_strided_slice %2 {offsets = [0, 1, 0], sizes = [1, 1, 4], strides = [1, 1, 1]} : vector<1x2x4xf32> to vector<1x1x4xf32>
    %8 = tpu.concatenate %6, %7 in 1 : vector<1x7x4xf32>, vector<1x1x4xf32> -> vector<1x8x4xf32>
    %9 = arith.truncf %5 : vector<1x8x4xf32> to vector<1x8x4xbf16>
    %10 = vector.shape_cast %9 : vector<1x8x4xbf16> to vector<8x4xbf16>
    %c0_6 = arith.constant 0 : index
    %c0_7 = arith.constant 0 : index
    %11 = vector.load %arg5[%c0_6, %c0_7] : memref<4x32xbf16, #tpu.memory_space<vmem>>, vector<4x32xbf16>
    %cst = arith.constant dense<0.000000e+00> : vector<8x32xf32>
    %12 = tpu.matmul %10, %11, %cst {dimension_numbers = #tpu.dot_dimension_numbers<[1], [0], [0], [1], [0, 0, 1, 1], [], []>} : vector<8x4xbf16>, vector<4x32xbf16>, vector<8x32xf32> -> vector<8x32xf32>
    %13 = arith.truncf %0 : vector<1x8x4xf32> to vector<1x8x4xbf16>
    %14 = vector.shape_cast %13 : vector<1x8x4xbf16> to vector<8x4xbf16>
    %c0_8 = arith.constant 0 : index
    %c0_9 = arith.constant 0 : index
    %15 = vector.load %arg6[%c0_8, %c0_9] : memref<4x32xbf16, #tpu.memory_space<vmem>>, vector<4x32xbf16>
    %cst_10 = arith.constant dense<0.000000e+00> : vector<8x32xf32>
    %16 = tpu.matmul %14, %15, %cst_10 {dimension_numbers = #tpu.dot_dimension_numbers<[1], [0], [0], [1], [0, 0, 1, 1], [], []>} : vector<8x4xbf16>, vector<4x32xbf16>, vector<8x32xf32> -> vector<8x32xf32>
    %17 = arith.addf %12, %16 : vector<8x32xf32>
    %18 = arith.truncf %8 : vector<1x8x4xf32> to vector<1x8x4xbf16>
    %19 = vector.shape_cast %18 : vector<1x8x4xbf16> to vector<8x4xbf16>
    %c0_11 = arith.constant 0 : index
    %c0_12 = arith.constant 0 : index
    %20 = vector.load %arg7[%c0_11, %c0_12] : memref<4x32xbf16, #tpu.memory_space<vmem>>, vector<4x32xbf16>
    %cst_13 = arith.constant dense<0.000000e+00> : vector<8x32xf32>
    %21 = tpu.matmul %19, %20, %cst_13 {dimension_numbers = #tpu.dot_dimension_numbers<[1], [0], [0], [1], [0, 0, 1, 1], [], []>} : vector<8x4xbf16>, vector<4x32xbf16>, vector<8x32xf32> -> vector<8x32xf32>
    %22 = arith.addf %17, %21 : vector<8x32xf32>
    %c0_14 = arith.constant 0 : index
    %c0_15 = arith.constant 0 : index
    %c0_16 = arith.constant 0 : index
    %23 = vector.load %arg4[%c0_14, %c0_15, %c0_16] : memref<1x8x4xi32, #tpu.memory_space<vmem>>, vector<1x8x4xi32>
    %24 = vector.shape_cast %23 : vector<1x8x4xi32> to vector<8x4xi32>
    %25 = tpu.iota {dimensions = array<i32: 1>} : vector<8x128xi32>
    %26 = vector.extract_strided_slice %24 {offsets = [0, 0], sizes = [8, 1], strides = [1, 1]} : vector<8x4xi32> to vector<8x1xi32>
    %c0_i32 = arith.constant 0 : i32
    %27 = vector.broadcast %c0_i32 : i32 to vector<8x1xi32>
    %28 = arith.addi %26, %27 : vector<8x1xi32>
    %29 = vector.broadcast %28 : vector<8x1xi32> to vector<8x128xi32>
    %30 = arith.cmpi eq, %29, %25 : vector<8x128xi32>
    %31 = vector.extract_strided_slice %24 {offsets = [0, 1], sizes = [8, 1], strides = [1, 1]} : vector<8x4xi32> to vector<8x1xi32>
    %c13_i32 = arith.constant 13 : i32
    %32 = vector.broadcast %c13_i32 : i32 to vector<8x1xi32>
    %33 = arith.addi %31, %32 : vector<8x1xi32>
    %34 = vector.broadcast %33 : vector<8x1xi32> to vector<8x128xi32>
    %35 = arith.cmpi eq, %34, %25 : vector<8x128xi32>
    %36 = arith.ori %30, %35 : vector<8x128xi1>
    %37 = vector.extract_strided_slice %24 {offsets = [0, 2], sizes = [8, 1], strides = [1, 1]} : vector<8x4xi32> to vector<8x1xi32>
    %c45_i32 = arith.constant 45 : i32
    %38 = vector.broadcast %c45_i32 : i32 to vector<8x1xi32>
    %39 = arith.addi %37, %38 : vector<8x1xi32>
    %40 = vector.broadcast %39 : vector<8x1xi32> to vector<8x128xi32>
    %41 = arith.cmpi eq, %40, %25 : vector<8x128xi32>
    %42 = arith.ori %36, %41 : vector<8x128xi1>
    %43 = vector.extract_strided_slice %24 {offsets = [0, 3], sizes = [8, 1], strides = [1, 1]} : vector<8x4xi32> to vector<8x1xi32>
    %c52_i32 = arith.constant 52 : i32
    %44 = vector.broadcast %c52_i32 : i32 to vector<8x1xi32>
    %45 = arith.addi %43, %44 : vector<8x1xi32>
    %46 = vector.broadcast %45 : vector<8x1xi32> to vector<8x128xi32>
    %47 = arith.cmpi eq, %46, %25 : vector<8x128xi32>
    %48 = arith.ori %42, %47 : vector<8x128xi1>
    %49 = arith.extui %48 : vector<8x128xi1> to vector<8x128xi32>
    %50 = arith.sitofp %49 : vector<8x128xi32> to vector<8x128xf32>
    %51 = arith.truncf %50 : vector<8x128xf32> to vector<8x128xbf16>
    %c0_17 = arith.constant 0 : index
    %c0_18 = arith.constant 0 : index
    %52 = vector.load %arg8[%c0_17, %c0_18] : memref<128x32xbf16, #tpu.memory_space<vmem>>, vector<128x32xbf16>
    %cst_19 = arith.constant dense<0.000000e+00> : vector<8x32xf32>
    %53 = tpu.matmul %51, %52, %cst_19 {dimension_numbers = #tpu.dot_dimension_numbers<[1], [0], [0], [1], [0, 0, 1, 1], [], []>} : vector<8x128xbf16>, vector<128x32xbf16>, vector<8x32xf32> -> vector<8x32xf32>
    %54 = arith.addf %22, %53 : vector<8x32xf32>
    %55 = vector.shape_cast %54 : vector<8x32xf32> to vector<1x8x32xf32>
    %c0_20 = arith.constant 0 : index
    %c0_21 = arith.constant 0 : index
    %56 = vector.load %arg9[%c0_20, %c0_21] : memref<8x32xbf16, #tpu.memory_space<vmem>>, vector<8x32xbf16>
    %57 = arith.extf %56 : vector<8x32xbf16> to vector<8x32xf32>
    %58 = vector.shape_cast %57 : vector<8x32xf32> to vector<1x8x32xf32>
    %59 = arith.addf %55, %58 : vector<1x8x32xf32>
    %c0_22 = arith.constant 0 : index
    %c0_23 = arith.constant 0 : index
    %c0_24 = arith.constant 0 : index
    %60 = vector.load %arg10[%c0_22, %c0_23, %c0_24] : memref<1x8x32xf32, #tpu.memory_space<vmem>>, vector<1x8x32xf32>
    tpu.vector_store %arg10[%c0_22, %c0_23, %c0_24], %59 {strides = array<i32>} : memref<1x8x32xf32, #tpu.memory_space<vmem>>, vector<1x8x32xf32>,
    return
  }
  func.func @transform_0(%arg0: i32, %arg1: i32) -> (i32, i32, i32) {
    %c0_i32 = arith.constant 0 : i32
    %c0_i32_0 = arith.constant 0 : i32
    return %arg1, %arg0, %c0_i32 : i32, i32, i32
  }
  func.func @transform_1(%arg0: i32, %arg1: i32) -> (i32, i32, i32, i32) {
    %c0_i32 = arith.constant 0 : i32
    %c0_i32_0 = arith.constant 0 : i32
    %c0_i32_1 = arith.constant 0 : i32
    return %arg1, %arg0, %c0_i32, %c0_i32_0 : i32, i32, i32, i32
  }
  func.func @transform_2(%arg0: i32, %arg1: i32) -> (i32, i32, i32) {
    %c0_i32 = arith.constant 0 : i32
    %c0_i32_0 = arith.constant 0 : i32
    return %arg1, %arg0, %c0_i32 : i32, i32, i32
  }
  func.func @transform_3(%arg0: i32, %arg1: i32) -> (i32, i32) {
    %c0_i32 = arith.constant 0 : i32
    %c0_i32_0 = arith.constant 0 : i32
    %c0_i32_1 = arith.constant 0 : i32
    return %c0_i32, %c0_i32_0 : i32, i32
  }
  func.func @transform_4(%arg0: i32, %arg1: i32) -> (i32, i32) {
    %c0_i32 = arith.constant 0 : i32
    %c0_i32_0 = arith.constant 0 : i32
    %c0_i32_1 = arith.constant 0 : i32
    return %c0_i32, %c0_i32_0 : i32, i32
  }
  func.func @transform_5(%arg0: i32, %arg1: i32) -> (i32, i32) {
    %c0_i32 = arith.constant 0 : i32
    %c0_i32_0 = arith.constant 0 : i32
    %c0_i32_1 = arith.constant 0 : i32
    return %c0_i32, %c0_i32_0 : i32, i32
  }
  func.func @transform_6(%arg0: i32, %arg1: i32) -> (i32, i32) {
    %c0_i32 = arith.constant 0 : i32
    %c0_i32_0 = arith.constant 0 : i32
    %c0_i32_1 = arith.constant 0 : i32
    return %c0_i32, %c0_i32_0 : i32, i32
  }
  func.func @transform_7(%arg0: i32, %arg1: i32) -> (i32, i32) {
    %c0_i32 = arith.constant 0 : i32
    %c0_i32_0 = arith.constant 0 : i32
    return %arg0, %c0_i32 : i32, i32
  }
  func.func @transform_8(%arg0: i32, %arg1: i32) -> (i32, i32, i32) {
    %c0_i32 = arith.constant 0 : i32
    %c0_i32_0 = arith.constant 0 : i32
    return %arg1, %arg0, %c0_i32 : i32, i32, i32
  }
}

</mosaic_0001>

<bundles_post_ra>
// kernel: tpu_custom_call.1
= control target key start
LH: loop header
LB: loop body
LE: loop exit
PB: predicated region body
PF: predicated region fallthrough
CT: control target
= control target key end

     0   :  { %s1386_s0 = inlined_call_operand.vmem [shape: f32[2,16,4], index: 0, kind: input, shape index: {}]   ;;  %s1387_s1 = inlined_call_operand.vmem [shape: f32[2,2,2,4], index: 1, kind: input, shape index: {}]   ;;  %s1388_s2 = inlined_call_operand.vmem [shape: s32[2,16,4], index: 2, kind: input, shape index: {}]   ;;  %s1389_s3 = inlined_call_operand.vmem [shape: bf16[4,32], index: 3, kind: input, shape index: {}]   ;;  %s1390_s4 = inlined_call_operand.vmem [shape: bf16[4,32], index: 4, kind: input, shape index: {}]   ;;  %s1391_s5 = inlined_call_operand.vmem [shape: bf16[4,32], index: 5, kind: input, shape index: {}]   ;;  %s1392_s6 = inlined_call_operand.vmem [shape: bf16[128,32], index: 6, kind: input, shape index: {}]   ;;  %s1393_s7 = inlined_call_operand.vmem [shape: bf16[16,32], index: 7, kind: input, shape index: {}]   ;;  %s1394_s8 = inlined_call_operand.hbm [shape: f32[2,16,32], index: 8, kind: output, shape index: {}]  }
   0x1   :  { %1400 = sst [smem:[#allocation11_spill]] %s1390_s4 }
   0x2   :  { %13 = vsyncpa [#allocation3], 0 }
   0x3   :  { %15 = vsyncpa [#allocation3 + $0x1], 0  ;;  %s1175_s27 = smov 0   ;;  %s1177_s28 = smov 0  }
   0x4   :  { %s1179_s29 = smov 0   ;;  %s1181_s30 = smov 0  }
   0x5   :  { %s1183_s9 = smov 0   ;;  %s1185_s10 = smov 0  }
   0x6   :  { %s1187_s11 = smov 0   ;;  %s1189_s12 = smov 0  }
   0x7 LB: > { %1401 = sst [smem:[#allocation5_spill]] %s1100_s29  ;;  %s850_s13 = sadd.s32 4294967295, %s1120_s12   ;;  %s1120_s12 = sphi %s1189_s12, %s21_s12   ;;  %s1116_s11 = sphi %s1187_s11, %s1415_s11   ;;  %s1112_s10 = sphi %s1185_s10, %s1414_s10   ;;  %s1108_s9 = sphi %s1183_s9, %s1413_s9   ;;  %s1104_s30 = sphi %s1181_s30, %s1412_s30   ;;  %s1100_s29 = sphi %s1179_s29, %s1411_s29   ;;  %s1096_s28 = sphi %s1177_s28, %s1417_s28   ;;  %s1092_s27 = sphi %s1175_s27, %s1416_s27  }
   0x8   : > { %1402 = sst [smem:[#allocation6_spill]] %s1112_s10  ;;  %s851_s14 = sadd.s32 4294967294, %s1120_s12  }
   0x9   : > { %1403 = sst [smem:[#allocation7_spill]] %s1116_s11  ;;  %s30_s15 = sadd.s32 1, %s1112_s10 }
   0xa   : > { %p31_p0 = scmp.ge.s32.totalorder %s30_s15, 2  ;;  %s33_s16 = sadd.s32 1, %s1116_s11 }
   0xb   : > { %p246_p1 = scmp.ne.s32.totalorder %s1100_s29, %s1096_s28  ;;  %p247_p2 = scmp.eq.s32.totalorder %s850_s13, 3 }
   0xc   : > { %s1419_s15 = smov (%p31_p0, %s30_s15), 0  ;;  %s1421_s16 = smov (!%p31_p0, %s33_s16), %s1116_s11 }
   0xd   : > { %1404 = sst [smem:[#allocation8_spill]] %s1419_s15  ;;  %s231_s17 = ssub.s32 %s1112_s10, %s1419_s15 }
   0xe   : > { %p1226_p3 = por %p247_p2, %p246_p1  ;;  %p35_p4 = scmp.ge.s32.totalorder %s1421_s16, 2 }
   0xf   : > { %p252_p5 = scmp.ne.s32.totalorder %s1096_s28, %s1092_s27  ;;  %p253_p6 = scmp.eq.s32.totalorder %s851_s14, 3 }
  0x10   : > { %p854_p7 = scmp.ge.s32.totalorder %s1120_s12, 1  ;;  %s1423_s16 = smov (%p35_p4, %s1421_s16), 0 }
  0x11   : > { %1406 = sst [smem:[#allocation9_spill]] %s1423_s16  ;;  %p1235_p8 = por %p253_p6, %p252_p5 }
  0x12   : > { %p323_p9 = scmp.lt.s32.totalorder %s1120_s12, 5  ;;  %s232_s20 = ssub.s32 %s1116_s11, %s1423_s16 }
  0x13   : > { %s236_s21 = sadd.s32 1, %s1100_s29  ;;  %s233_s22 = sor.u32 %s232_s20, %s231_s17 }
  0x14   : > { %p324_p10 = pnand %p854_p7, %p323_p9  ;;  %p234_p11 = scmp.eq.s32.totalorder %s233_s22, 0 }
  0x15   : > { %p380_p12 = scmp.lt.s32.totalorder (!%p324_p10), %s1104_s30, 1  ;;  %p382_p13 = scmp.lt.s32.totalorder (!%p324_p10), %s1108_s9, 1  ;;  %v1122_v0 = vmov (!%p324_p10), 0   ;;  %v1123_v1 = vmov (!%p324_p10), 2   ;;  %vm431_vm0 = vcmask (!%p324_p10), 1041408   ;;  %v1124_v3 = vmov (!%p324_p10), 0.0  }
  0x16   : > { %s1244_s23 = scalar_select %p234_p11, %s1100_s29, %s236_s21  }
  0x17   : > { %327 = sbr.rel (%p324_p10) target bundleno = 405 (0x195), region = 52  ;;  %1013 = vset.pattern.permute.xlu0 (!%p324_p10), %v1122_v0  ;;  %1015 = vset.pattern.permute.xlu1 (!%p324_p10), %v1123_v1  ;;  %s1409_s4 = sld [smem:[#allocation11_spill]] (!%p324_p10)  ;;  %vm1125_vm1 = vmmov (!%p324_p10), 0   ;;  %v1018_v5 = vld [vmem:[%s1392_s6] sm:$0xff] (!%p324_p10)   ;;  %v1019_v6 = vld [vmem:[%s1392_s6 + $0x8] sm:$0xff] (!%p324_p10)   ;;  %vm414_vm2 = vcmask (!%p324_p10), 1040384   ;;  %v571_v33 = vlaneseq (!%p324_p10) }
  0x18   : > { %1408 = sst [smem:[#allocation10_spill]] %s1244_s23  ;;  %897 = vmatprep.subr.bf16.mxu0 (!%p324_p10), %v1124_v3  ;;  %899 = vmatprep.mubr.msk.bf16.mxu0 (!%p324_p10), %vm1125_vm1, %v1124_v3  ;;  %v424_v7 = vld [vmem:[%s1389_s3] sm:$0x3] (!%p324_p10)  ;;  %v1020_v9 = vld [vmem:[%s1392_s6 + $0x10] sm:$0xff] (!%p324_p10)   ;;  %vm427_vm3 = vcmask (!%p324_p10), 31744   ;;  %v1126_v19 = vmov (!%p324_p10), 1  }
  0x19   : > { %915 = vmatprep.subr.bf16.mxu1 (!%p324_p10), %v1124_v3  ;;  %931 = vmatprep.mubr.msk.bf16.mxu1 (!%p324_p10), %vm1125_vm1, %v1124_v3  ;;  %v479_v13 = vsel (!%p324_p10), %vm431_vm0, %v424_v7, 0  ;;  %v1021_v20 = vld [vmem:[%s1392_s6 + $0x18] sm:$0xff] (!%p324_p10)   ;;  %v1127_v21 = vmov (!%p324_p10), 3   ;;  %v522_v22 = vld [vmem:[%s1391_s5] sm:$0x3] (!%p324_p10)  ;;  %vm421_vm4 = vcmask (!%p324_p10), 1046528  }
  0x1a   : > { %916 = vmatpush3.bf16.msra.mxu1 (!%p324_p10), %v1018_v5  ;;  %v527_v26 = vsel (!%p324_p10), %vm431_vm0, %v522_v22, 0  ;;  %v1022_v27 = vld [vmem:[%s1392_s6 + $0x20] sm:$0xff] (!%p324_p10)   ;;  %v1023_v29 = vld [vmem:[%s1392_s6 + $0x28] sm:$0xff] (!%p324_p10)   ;;  %v1024_v31 = vld [vmem:[%s1392_s6 + $0x30] sm:$0xff] (!%p324_p10)   ;;  %v572_v35 = vand.u32 (!%p324_p10), 127, %v571_v33  ;;  %s377_s22 = sand.u32 (!%p324_p10), 1, %s1096_s28  }
  0x1b   : > { %917 = vmatprep.subr.bf16.mxu1 (!%p324_p10), %v1124_v3  ;;  %v1025_v32 = vld [vmem:[%s1392_s6 + $0x38] sm:$0xff] (!%p324_p10)   ;;  %v1128_v39 = vmov (!%p324_p10), 1.0|1.0   ;;  %s855_s10 = sshll.u32 (!%p324_p10), %s377_s22, 3  ;;  %s878_s11 = sshll.u32 (!%p324_p10), %s1104_s30, 1  ;;  %vm706_vm13 = vcmask (!%p324_p10), 261120  }
  0x1d   : > { %v426_v2 = vld [vmem:[%s1409_s4] sm:$0x3] (!%p324_p10) }
  0x1e   : > { %s381_s26 = scalar_select %p380_p12, %s1104_s30, 1  ;;  %v433_v4 = vsel %vm431_vm0, %v426_v2, 0  ;;  %918 = vmatpush3.bf16.msra.mxu1 %v1019_v6 }
  0x1f   : > { %s1262_s17 = scalar_select %p382_p13, %s1108_s9, 1  ;;  %898 = vmatpush3.bf16.msra.mxu0 %v433_v4  ;;  %919 = vmatprep.subr.bf16.mxu1 %v1124_v3 }
  0x20   : > { %s856_s20 = sshll.u32 %s381_s26, 1  ;;  %903 = vmatprep.subr.bf16.mxu0 %v1124_v3  ;;  %s709_s30 = scalar_lea.sflag [#allocation3], %s377_s22 }
  0x21   : > { %s385_s24 = sadd.s32 %s856_s20, %s1262_s17  ;;  %s862_s20 = sshll.u32 %s1262_s17, 2 }
  0x22   : > { %s857_s25 = sshll.u32 %s385_s24, 3  ;;  %s859_s13 = sshll.u32 %s385_s24, 1  ;;  %920 = vmatpush3.bf16.msra.mxu1 %v1020_v9 }
  0x23   : > { %s395_s15 = scalar_lea.vmem %s1387_s1, %s859_s13  ;;  %s403_s21 = scalar_lea.vmem %s1388_s2, %s857_s25  ;;  %921 = vmatprep.subr.bf16.mxu1 %v1124_v3 }
  0x24   : > { %v570_v8 = vld [vmem:[%s403_s21] sm:$0xff]  ;;  %s387_s23 = scalar_lea.vmem %s1386_s0, %s857_s25  ;;  %s407_s29 = scalar_lea.vmem %s1393_s7, %s862_s20 }
  0x25   : > { %v410_v10 = vld [vmem:[%s395_s15] sm:$0x3]  ;;  %574 = vperm.xlu0 %1013, %v570_v8   ;;  %v583_v12 = vadd.s32 45, %v570_v8  ;;  %v577_v15 = vadd.s32 13, %v570_v8  ;;  %v589_v17 = vadd.s32 52, %v570_v8  ;;  %s720_s15 = sadd.s32 %s1108_s9, %s878_s11  ;;  %s1129_s26 = smov [#allocation2]  }
  0x26   : > { %v409_v11 = vld [vmem:[%s387_s23] sm:$0xff]  ;;  %v419_v24 = vrot.slane %v410_v10, 2  ;;  %922 = vmatpush3.bf16.msra.mxu1 %v1021_v20  ;;  %s879_s16 = sshll.u32 %s720_s15, 7  ;;  %s379_s23 = scalar_lea.vmem [#allocation2], %s855_s10 }
  0x27   : > { %v412_v14 = vrot.slane %v409_v11, 7  ;;  %v425_v16 = vpack.c.bf16 %v409_v11, %v409_v11  ;;  %585 = vperm.xlu1 %1015, %v583_v12   ;;  %v416_v25 = vrot.slane %v409_v11, 1  ;;  %923 = vmatprep.subr.bf16.mxu1 %v1124_v3  ;;  %v703_v54 = vld [vmem:[%s407_s29] sm:$0xf]  ;;  %s724_s25 = sshll.u32 %s379_s23, 4  ;;  %s1333_s14 = scalar_lea.hbm %s1394_s8, %s879_s16  ;;  %s1335_s25 = int_to_ptr.vmem [resolvable:$true] %s724_s25 }
  0x28   : > { %v704_v55 = vunpack.c.l.bf16 %v703_v54  ;;  %s1026_s9 = scalar_lea.vmem %s1335_s25, 128  ;;  %s1030_s21 = sshll.u32 %s1129_s26, 4  ;;  %s1031_s21 = int_to_ptr.vmem [resolvable:$false] %s1030_s21 }
  0x29   : > { %900 = vmatmul.mubr.msk.bf16.vlgmr.msra.gmra.mrb[0].mxu0 %vm427_vm3, %v425_v16  ;;  %v415_v18 = vsel %vm414_vm2, %v410_v10, %v412_v14  ;;  %1014 = vset.pattern.permute.xlu0 %v1126_v19  ;;  %v422_v28 = vsel %vm421_vm4, %v416_v25, %v419_v24  ;;  %p1027_p0 = scmp.ne.s32.totalorder %s1335_s25, %s1026_s9  ;;  %s1032_s20 = scalar_lea.vmem %s1031_s21, 256 }
  0x2a   : > { %904 = vmatpush3.bf16.msra.mxu0 %v479_v13  ;;  %579 = vperm.xlu0 %1014, %v577_v15   ;;  %v423_v23 = vpack.c.bf16 %v415_v18, %v415_v18  ;;  %v521_v30 = vpack.c.bf16 %v422_v28, %v422_v28  ;;  %p1033_p4 = scmp.lt.s32.totalorder %s1335_s25, %s1031_s21  ;;  %p1034_p5 = scmp.lt.s32.totalorder %s1032_s20, %s1026_s9 }
  0x2b   : > { %905 = vmatprep.mubr.msk.bf16.mxu0 %vm1125_vm1, %v1124_v3  ;;  %1016 = vset.pattern.permute.xlu1 %v1127_v21  ;;  %p1028_p1 = pnand %p1027_p0, %p1226_p3 }
  0x2c   : > { %909 = vmatprep.subr.bf16.mxu0 %v1124_v3  ;;  %591 = vperm.xlu1 %1016, %v589_v17   ;;  %p1035_p6 = por %p1034_p5, %p1033_p4 }
  0x2d   : > { %924 = vmatpush3.bf16.msra.mxu1 %v1022_v27  ;;  %p1029_p2 = pneg %p1028_p1 }
  0x2e   : > { %1017 = vset.pattern.permute.xlu0 %v1127_v21  ;;  %925 = vmatprep.subr.bf16.mxu1 %v1124_v3 }
  0x2f   : > { %p1036_p7 = pnand %p1035_p6, %p1029_p2 }
  0x31   : > { %906 = vmatmul.mubr.msk.bf16.vlgmr.msra.gmra.mrb[4].mxu0 %vm427_vm3, %v423_v23  ;;  %926 = vmatpush3.bf16.msra.mxu1 %v1023_v29 }
  0x32   : > { %910 = vmatpush3.bf16.msra.mxu0 %v527_v26  ;;  %911 = vmatprep.mubr.msk.bf16.mxu0 %vm1125_vm1, %v1124_v3 }
  0x33   : > { %927 = vmatprep.subr.bf16.mxu1 %v1124_v3 }
  0x35   : > { %928 = vmatpush3.bf16.msra.mxu1 %v1024_v31 }
  0x36   : > { %929 = vmatprep.subr.bf16.mxu1 %v1124_v3 }
  0x39   : > { %912 = vmatmul.mubr.msk.bf16.vlgmr.msra.gmra.mrb[8].mxu0 %vm427_vm3, %v521_v30  ;;  %930 = vmatpush3.bf16.msra.mxu1 %v1025_v32 }
  0xa4   : > { %v575_v34 = vpop.permute.xlu0 %574 }
  0xa5   : > { %vm576_vm5 = vcmp.eq.s32.totalorder %v575_v34, %v572_v35 }
  0xa6   : > { %v586_v36 = vpop.permute.xlu1 %585 }
  0xa7   : > { %vm587_vm7 = vcmp.eq.s32.totalorder %v586_v36, %v572_v35 }
  0xa9   : > { %v580_v37 = vpop.permute.xlu0 %579 }
  0xaa   : > { %vm581_vm6 = vcmp.eq.s32.totalorder %v580_v37, %v572_v35 }
  0xab   : > { %vm582_vm8 = vmor %vm576_vm5, %vm581_vm6  ;;  %v592_v38 = vpop.permute.xlu1 %591 }
  0xac   : > { %vm588_vm9 = vmor %vm582_vm8, %vm587_vm7  ;;  %vm593_vm10 = vcmp.eq.s32.totalorder %v592_v38, %v572_v35 }
  0xad   : > { %vm594_vm11 = vmor %vm588_vm9, %vm593_vm10 }
  0xae   : > { %vm875_vm12 = vmpackc.low %vm594_vm11, %vm594_vm11 }
  0xaf   : > { %932 = vmatmul.mubr.msk.bf16.vlgmr.msra.gmra.mrb[0].mxu1 %vm875_vm12, %v1128_v39 }
  0xfc   : > { %v469_v40 = vpop.f32.mrb[0].mxu0 }
  0xfd   : > { %v901_v41 = vpop.f32.mrb[1].mxu0 }
  0xfe   : > { %v472_v42 = vpop.f32.mrb[2].mxu0 }
  0xff   : > { %v902_v43 = vpop.f32.mrb[3].mxu0 }
 0x104   : > { %v515_v44 = vpop.f32.mrb[4].mxu0 }
 0x105   : > { %v516_v45 = vadd.f32 %v515_v44, %v469_v40  ;;  %v907_v46 = vpop.f32.mrb[5].mxu0 }
 0x106   : > { %v518_v47 = vpop.f32.mrb[6].mxu0 }
 0x107   : > { %v908_v48 = vpop.f32.mrb[7].mxu0 }
 0x10c   : > { %v563_v49 = vpop.f32.mrb[8].mxu0 }
 0x10d   : > { %v569_v50 = vadd.f32 %v563_v49, %v516_v45  ;;  %v913_v51 = vpop.f32.mrb[9].mxu0 }
 0x10e   : > { %v566_v52 = vpop.f32.mrb[10].mxu0 }
 0x10f   : > { %v914_v53 = vpop.f32.mrb[11].mxu0 }
 0x182   : > { %v696_v56 = vpop.f32.mrb[0].mxu1 }
 0x183   : > { %v702_v57 = vadd.f32 %v696_v56, %v569_v50  ;;  %v933_v58 = vpop.f32.mrb[1].mxu1 }
 0x184   : > { %v699_v59 = vpop.f32.mrb[2].mxu1 }
 0x185   : > { %v705_v60 = vadd.f32 %v704_v55, %v702_v57  ;;  %v934_v61 = vpop.f32.mrb[3].mxu1 }
 0x187   : > { %707 = vst.msk [vmem:[%s379_s23] sm:$0xff] %vm706_vm13, %v705_v60 }
 0x188   : > { %1039 = shalt.err (!%p1036_p7)
}
 0x189   : > { %s1040_s22 = scalar_lea.hbm %s1333_s14, 128  ;;  %s1044_s29 = scalar_lea.hbm %s1394_s8, 512 }
 0x18a   : > { %p1041_p9 = scmp.ne.s32.totalorder %s1333_s14, %s1040_s22  ;;  %p1045_p12 = scmp.lt.u32.totalorder %s1333_s14, %s1394_s8 }
 0x18b   : > { %p1046_p13 = scmp.lt.u32.totalorder %s1044_s29, %s1040_s22  ;;  %p1048_p1 = scmp.lt.u32.totalorder %s1040_s22, %s1333_s14 }
 0x18c   : > { %p1042_p10 = pnand %p1041_p9, %p1226_p3 }
 0x18d   : > { %p1047_p0 = por %p1046_p13, %p1045_p12 }
 0x18e   : > { %p1043_p11 = pneg %p1042_p10 }
 0x18f   : > { %p1049_p2 = por %p1048_p1, %p1047_p0 }
 0x191   : > { %p1050_p4 = pnand %p1049_p2, %p1043_p11 }
 0x193   : > { %1053 = shalt.err (!%p1050_p4)
}
 0x194   : > { %935 = dma.vmem_to_hbm [thread:$0]  (%p1226_p3), %s1335_s25, 128, %s1333_s14, %s709_s30  }
 0x195 PF: > { %p941_p5 = scmp.ge.s32.totalorder %s1120_s12, 2  ;;  %s736_s15 = sand.u32 1, %s1092_s27  }
 0x196   : > { %s737_s16 = scalar_lea.sflag [#allocation3], %s736_s15 }
 0x197   : > { %p938_p6 = pnand %p941_p5, %p1235_p8 }
 0x199   : > { %1087 = dma.done.wait (!%p938_p6), %s737_s16, 128  }
 0x19a   : > { %1089 = vsyncadd (!%p938_p6), %s737_s16, 4294967168  ;;  %s21_s12 = sadd.s32 1, %s1120_s12   ;;  %s1410_s23 = sld [smem:[#allocation5_spill]] }
 0x19b   : > { %p18_p7 = scmp.ge.s32.totalorder %s21_s12, 6   ;;  %s1411_s29 = sld [smem:[#allocation10_spill]] }
 0x19c   : > { %s1412_s30 = sld [smem:[#allocation6_spill]]  ;;  %s1413_s9 = sld [smem:[#allocation7_spill]] }
 0x19d   : > { %s1414_s10 = sld [smem:[#allocation8_spill]]  ;;  %s1415_s11 = sld [smem:[#allocation9_spill]] }
 0x19e   : > { %s1416_s27 = smov %s1096_s28  ;;  %20 = sbr.rel (!%p18_p7) target bundleno = 7 (0x7), region = 96 }
 0x1a0   : > { %s1417_s28 = smov %s1410_s23 }
 0x1a5   :  { %742 = vsyncpa [#allocation3], 1 }
 0x1a6   :  { %744 = vsyncpa [#allocation3 + $0x1], 1 }

</bundles_post_ra>
